<compile_context>
chip_gen: v7x
topology: tpu7x:2x2x1
jax: 0.10.0
libtpu: 0.0.40
codegen_flags: <defaults>
</compile_context>

<pallas_src>
import jax
import jax.numpy as jnp
from jax.experimental import pallas as pl
from jax.experimental.pallas import tpu as pltpu


def _round_up(v, m):
    return ((v + m - 1) // m) * m


def _pad2(a, rows, cols):
    return jnp.pad(a, ((0, rows - a.shape[0]), (0, cols - a.shape[1])))


def _make_graphnet_kernel(num_layers):
    """Kernel signature: (adj, x, pool, w0, b0, ..., w_{L-1}, b_{L-1}, out)."""

    def kernel(adj_ref, x_ref, pool_ref, *rest):
        out_ref = rest[-1]
        adj = adj_ref[...]                     # (Np, Np)   normalized adjacency
        h = x_ref[...]                         # (Np, F0p)  node features
        for l in range(num_layers):            # unrolled at trace time
            w = rest[2 * l][...]               # (Fin_p, Fout_p)
            b = rest[2 * l + 1][...]           # (1, Fout_p)
            hw = jnp.dot(h, w, preferred_element_type=jnp.float32)
            agg = jnp.dot(adj, hw, preferred_element_type=jnp.float32)
            h = jnp.maximum(agg + b, 0.0)      # GCNConv bias + ReLU
        # global_add_pool as a lane-dense matmul with the one-hot pool matrix
        out_ref[...] = jnp.dot(pool_ref[...], h,
                               preferred_element_type=jnp.float32)

    return kernel


def build_norm_adj(edge_index, num_nodes):
    """Dense D^-1/2 (A + I) D^-1/2 from a (2, E) int32 edge_index (GCN norm)."""
    row, col = edge_index[0], edge_index[1]
    a = jnp.zeros((num_nodes, num_nodes), jnp.float32).at[row, col].set(1.0)
    a = a + jnp.eye(num_nodes, dtype=jnp.float32)          # self-loops
    deg = a.sum(axis=1)
    d_inv_sqrt = jnp.where(deg > 0, jax.lax.rsqrt(deg), 0.0)
    return d_inv_sqrt[:, None] * a * d_inv_sqrt[None, :]


def graphnet_forward(x, edge_index, batch_vec, weights, biases, num_graphs):
    """x: (N, F0) f32, edge_index: (2, E) i32, batch_vec: (N,) i32.
    Returns (num_graphs, F_out) f32 = global_add_pool over the GCN stack."""
    n, f0 = x.shape
    num_layers = len(weights)
    f_out = weights[-1].shape[1]

    adj = build_norm_adj(edge_index, n)                       # (N, N)
    pool = jax.nn.one_hot(batch_vec, num_graphs, dtype=jnp.float32).T  # (B, N)

    # Pad to vreg / MXU friendly tiles: nodes -> 128 lanes, graphs -> 8 sublanes.
    n_pad = _round_up(n, 128)
    b_pad = _round_up(num_graphs, 8)
    f0_pad = _round_up(f0, 128)
    f_out_pad = _round_up(f_out, 128)

    adj_p = _pad2(adj, n_pad, n_pad)
    x_p = _pad2(x.astype(jnp.float32), n_pad, f0_pad)
    pool_p = _pad2(pool, b_pad, n_pad)

    wb = []
    for w, b in zip(weights, biases):
        fi, fo = w.shape
        wb.append(_pad2(w.astype(jnp.float32),
                        _round_up(fi, 128), _round_up(fo, 128)))
        wb.append(_pad2(b.reshape(1, -1).astype(jnp.float32),
                        1, _round_up(fo, 128)))

    out_p = pl.pallas_call(
        _make_graphnet_kernel(num_layers),
        out_shape=jax.ShapeDtypeStruct((b_pad, f_out_pad), jnp.float32),
        in_specs=[pl.BlockSpec(memory_space=pltpu.MemorySpace.VMEM)]
        * (3 + 2 * num_layers),
        out_specs=pl.BlockSpec(memory_space=pltpu.MemorySpace.VMEM),
    )(adj_p, x_p, pool_p, *wb)

    return out_p[:num_graphs, :f_out]


# ---------------- pure-JAX reference (for correctness check) ----------------
def graphnet_reference(x, edge_index, batch_vec, weights, biases, num_graphs):
    adj = build_norm_adj(edge_index, x.shape[0])
    h = x.astype(jnp.float32)
    for w, b in zip(weights, biases):
        h = jnp.maximum(adj @ (h @ w) + b, 0.0)
    pool = jax.nn.one_hot(batch_vec, num_graphs, dtype=jnp.float32).T
    return pool @ h


if __name__ == "__main__":
    num_node_features = 4
    graph_layers_sizes = [32, 32]       # two GCN layers: 4 -> 32 -> 32
    nodes_per_graph = 8
    num_graphs = 2
    n_nodes = nodes_per_graph * num_graphs

    key = jax.random.PRNGKey(0)
    k_x, *k_w = jax.random.split(key, 1 + 2 * len(graph_layers_sizes))

    x = jax.random.normal(k_x, (n_nodes, num_node_features), jnp.float32)

    # Deterministic graph structure: per graph a bidirected chain plus one
    # bidirected chord (first <-> last node).
    src, dst = [], []
    for g in range(num_graphs):
        s = g * nodes_per_graph
        for i in range(nodes_per_graph - 1):
            src += [s + i, s + i + 1]
            dst += [s + i + 1, s + i]
        src += [s, s + nodes_per_graph - 1]
        dst += [s + nodes_per_graph - 1, s]
    edge_index = jnp.array([src, dst], dtype=jnp.int32)          # (2, 32)
    batch_vec = jnp.repeat(jnp.arange(num_graphs, dtype=jnp.int32),
                           nodes_per_graph)                      # (16,)

    sizes = [num_node_features] + graph_layers_sizes
    weights, biases = [], []
    for i in range(len(sizes) - 1):
        fan_in, fan_out = sizes[i], sizes[i + 1]
        scale = (6.0 / (fan_in + fan_out)) ** 0.5                # glorot-ish
        weights.append(jax.random.uniform(k_w[2 * i], (fan_in, fan_out),
                                          jnp.float32, -scale, scale))
        biases.append(jax.random.uniform(k_w[2 * i + 1], (fan_out,),
                                         jnp.float32, -0.1, 0.1))

    out = graphnet_forward(x, edge_index, batch_vec, weights, biases, num_graphs)
    out = jax.block_until_ready(out)

    ref = graphnet_reference(x, edge_index, batch_vec, weights, biases,
                             num_graphs)
    assert out.shape == (num_graphs, graph_layers_sizes[-1]), out.shape
    assert jnp.allclose(out, ref, atol=1e-4, rtol=1e-4), "mismatch vs reference"

    print("KERNEL_OK")
</pallas_src>

<mosaic_0001>
module attributes {stable_mosaic.version = 11 : i64} {
  func.func @kernel(%arg0: memref<128x128xf32, #tpu.memory_space<vmem>>, %arg1: memref<128x128xf32, #tpu.memory_space<vmem>>, %arg2: memref<8x128xf32, #tpu.memory_space<vmem>>, %arg3: memref<128x128xf32, #tpu.memory_space<vmem>>, %arg4: memref<1x128xf32, #tpu.memory_space<vmem>>, %arg5: memref<128x128xf32, #tpu.memory_space<vmem>>, %arg6: memref<1x128xf32, #tpu.memory_space<vmem>>, %arg7: memref<8x128xf32, #tpu.memory_space<vmem>>) attributes {dimension_semantics = [], scalar_prefetch = 0 : i64, scratch_operands = 0 : i64, tpu.core_type = #tpu.core_type<tc>} {
    %c0 = arith.constant 0 : index
    %c0_0 = arith.constant 0 : index
    %0 = vector.load %arg0[%c0, %c0_0] : memref<128x128xf32, #tpu.memory_space<vmem>>, vector<128x128xf32>
    %c0_1 = arith.constant 0 : index
    %c0_2 = arith.constant 0 : index
    %1 = vector.load %arg1[%c0_1, %c0_2] : memref<128x128xf32, #tpu.memory_space<vmem>>, vector<128x128xf32>
    %c0_3 = arith.constant 0 : index
    %c0_4 = arith.constant 0 : index
    %2 = vector.load %arg3[%c0_3, %c0_4] : memref<128x128xf32, #tpu.memory_space<vmem>>, vector<128x128xf32>
    %c0_5 = arith.constant 0 : index
    %c0_6 = arith.constant 0 : index
    %3 = vector.load %arg4[%c0_5, %c0_6] : memref<1x128xf32, #tpu.memory_space<vmem>>, vector<1x128xf32>
    %cst = arith.constant dense<0.000000e+00> : vector<128x128xf32>
    %4 = tpu.matmul %1, %2, %cst {dimension_numbers = #tpu.dot_dimension_numbers<[1], [0], [0], [1], [0, 0, 1, 1], [], []>} : vector<128x128xf32>, vector<128x128xf32>, vector<128x128xf32> -> vector<128x128xf32>
    %cst_7 = arith.constant dense<0.000000e+00> : vector<128x128xf32>
    %5 = tpu.matmul %0, %4, %cst_7 {dimension_numbers = #tpu.dot_dimension_numbers<[1], [0], [0], [1], [0, 0, 1, 1], [], []>} : vector<128x128xf32>, vector<128x128xf32>, vector<128x128xf32> -> vector<128x128xf32>
    %6 = vector.broadcast %3 : vector<1x128xf32> to vector<128x128xf32>
    %7 = arith.addf %5, %6 : vector<128x128xf32>
    %cst_8 = arith.constant 0.000000e+00 : f32
    %8 = vector.broadcast %cst_8 : f32 to vector<128x128xf32>
    %9 = arith.maximumf %7, %8 : vector<128x128xf32>
    %c0_9 = arith.constant 0 : index
    %c0_10 = arith.constant 0 : index
    %10 = vector.load %arg5[%c0_9, %c0_10] : memref<128x128xf32, #tpu.memory_space<vmem>>, vector<128x128xf32>
    %c0_11 = arith.constant 0 : index
    %c0_12 = arith.constant 0 : index
    %11 = vector.load %arg6[%c0_11, %c0_12] : memref<1x128xf32, #tpu.memory_space<vmem>>, vector<1x128xf32>
    %cst_13 = arith.constant dense<0.000000e+00> : vector<128x128xf32>
    %12 = tpu.matmul %9, %10, %cst_13 {dimension_numbers = #tpu.dot_dimension_numbers<[1], [0], [0], [1], [0, 0, 1, 1], [], []>} : vector<128x128xf32>, vector<128x128xf32>, vector<128x128xf32> -> vector<128x128xf32>
    %cst_14 = arith.constant dense<0.000000e+00> : vector<128x128xf32>
    %13 = tpu.matmul %0, %12, %cst_14 {dimension_numbers = #tpu.dot_dimension_numbers<[1], [0], [0], [1], [0, 0, 1, 1], [], []>} : vector<128x128xf32>, vector<128x128xf32>, vector<128x128xf32> -> vector<128x128xf32>
    %14 = vector.broadcast %11 : vector<1x128xf32> to vector<128x128xf32>
    %15 = arith.addf %13, %14 : vector<128x128xf32>
    %cst_15 = arith.constant 0.000000e+00 : f32
    %16 = vector.broadcast %cst_15 : f32 to vector<128x128xf32>
    %17 = arith.maximumf %15, %16 : vector<128x128xf32>
    %c0_16 = arith.constant 0 : index
    %c0_17 = arith.constant 0 : index
    %18 = vector.load %arg2[%c0_16, %c0_17] : memref<8x128xf32, #tpu.memory_space<vmem>>, vector<8x128xf32>
    %cst_18 = arith.constant dense<0.000000e+00> : vector<8x128xf32>
    %19 = tpu.matmul %18, %17, %cst_18 {dimension_numbers = #tpu.dot_dimension_numbers<[1], [0], [0], [1], [0, 0, 1, 1], [], []>} : vector<8x128xf32>, vector<128x128xf32>, vector<8x128xf32> -> vector<8x128xf32>
    %c0_19 = arith.constant 0 : index
    %c0_20 = arith.constant 0 : index
    %20 = vector.load %arg7[%c0_19, %c0_20] : memref<8x128xf32, #tpu.memory_space<vmem>>, vector<8x128xf32>
    tpu.vector_store %arg7[%c0_19, %c0_20], %19 {strides = array<i32>} : memref<8x128xf32, #tpu.memory_space<vmem>>, vector<8x128xf32>,
    return
  }
}

</mosaic_0001>

<bundles_post_ra>
// kernel: tpu_custom_call.1
= control target key start
LH: loop header
LB: loop body
LE: loop exit
PB: predicated region body
PF: predicated region fallthrough
CT: control target
= control target key end

     0   :  { %12 = vsyncpa [#allocation3], 0  ;;  %s1819_s0 = inlined_call_operand.hbm [shape: f32[128,128], index: 0, kind: input, shape index: {}]   ;;  %s1820_s1 = inlined_call_operand.hbm [shape: f32[128,128], index: 1, kind: input, shape index: {}]   ;;  %s1821_s2 = inlined_call_operand.hbm [shape: f32[8,128], index: 2, kind: input, shape index: {}]   ;;  %s1822_s3 = inlined_call_operand.hbm [shape: f32[128,128], index: 3, kind: input, shape index: {}]   ;;  %s1823_s4 = inlined_call_operand.vmem [shape: f32[1,128], index: 4, kind: input, shape index: {}]   ;;  %s1824_s5 = inlined_call_operand.hbm [shape: f32[128,128], index: 5, kind: input, shape index: {}]   ;;  %s1825_s6 = inlined_call_operand.vmem [shape: f32[1,128], index: 6, kind: input, shape index: {}]   ;;  %s1826_s7 = inlined_call_operand.hbm [shape: f32[8,128], index: 7, kind: output, shape index: {}]  }
   0x1   :  { %13 = vsyncpa [#allocation6], 0 }
   0x2   :  { %14 = vsyncpa [#allocation9], 0 }
   0x3   :  { %15 = vsyncpa [#allocation4], 0  ;;  %s1581_s24 = smov [#allocation5]   ;;  %s1582_s26 = smov [#allocation8]  }
   0x4   :  { %s33_s25 = sshll.u32 %s1581_s24, 4  ;;  %s55_s27 = sshll.u32 %s1582_s26, 4  ;;  %s34_s25 = int_to_ptr.vmem [resolvable:$true] %s33_s25  ;;  %s1632_s27 = int_to_ptr.vmem [resolvable:$true] %s55_s27 }
   0x5   :  { %s1441_s30 = scalar_lea.hbm %s1820_s1, 2048 }
   0x6   :  { %p1442_p0 = scmp.ne.s32.totalorder %s1820_s1, %s1441_s30  ;;  %p1445_p1 = scmp.lt.u32.totalorder %s1441_s30, %s1820_s1 }
   0x8   :  { %p1447_p2 = pnand %p1445_p1, %p1442_p0 }
   0xa   :  { %1450 = shalt.err (!%p1447_p2)
}
   0xb   :  { %s1451_s12 = scalar_lea.vmem %s34_s25, 2048  ;;  %p1456_p4 = scmp.lt.s32.totalorder %s34_s25, %s34_s25 }
   0xc   :  { %p1452_p3 = scmp.ne.s32.totalorder %s34_s25, %s1451_s12  ;;  %p1457_p5 = scmp.lt.s32.totalorder %s1451_s12, %s1451_s12 }
   0xe   :  { %p1458_p6 = por %p1457_p5, %p1456_p4 }
  0x10   :  { %p1459_p7 = pnand %p1458_p6, %p1452_p3 }
  0x12   :  { %1462 = shalt.err (!%p1459_p7)
}
  0x13   :  { %s1583_s13 = smov 128   ;;  %s1584_s14 = smov 8  }
  0x14   :  { %39 = dma.hbm_to_vmem [thread:$0]  %s1820_s1, 2048, %s34_s25, [#allocation6], %s1583_s13, %s1583_s13, %s1584_s14  }
  0x15   :  { %s1463_s19 = scalar_lea.hbm %s1822_s3, 2048 }
  0x16   :  { %p1464_p8 = scmp.ne.s32.totalorder %s1822_s3, %s1463_s19  ;;  %p1467_p9 = scmp.lt.u32.totalorder %s1463_s19, %s1822_s3 }
  0x18   :  { %p1469_p10 = pnand %p1467_p9, %p1464_p8 }
  0x1a   :  { %1472 = shalt.err (!%p1469_p10)
}
  0x1b   :  { %s1473_s24 = scalar_lea.vmem %s1632_s27, 2048  ;;  %p1478_p12 = scmp.lt.s32.totalorder %s1632_s27, %s1632_s27 }
  0x1c   :  { %p1474_p11 = scmp.ne.s32.totalorder %s1632_s27, %s1473_s24  ;;  %p1479_p13 = scmp.lt.s32.totalorder %s1473_s24, %s1473_s24 }
  0x1e   :  { %p1480_p0 = por %p1479_p13, %p1478_p12 }
  0x20   :  { %p1481_p1 = pnand %p1480_p0, %p1474_p11 }
  0x22   :  { %1484 = shalt.err (!%p1481_p1)
}
  0x23   :  { %61 = dma.hbm_to_vmem [thread:$0]  %s1822_s3, 2048, %s1632_s27, [#allocation9], %s1583_s13, %s1583_s13, %s1584_s14  }
  0x24   :  { %s1585_s26 = smov [#allocation2]   ;;  %s1586_s29 = smov [#allocation7]  }
  0x25   :  { %s21_s28 = sshll.u32 %s1585_s26, 4  ;;  %s46_s30 = sshll.u32 %s1586_s29, 4  ;;  %s22_s28 = int_to_ptr.vmem [resolvable:$true] %s21_s28  ;;  %s47_s30 = int_to_ptr.vmem [resolvable:$true] %s46_s30 }
  0x26   :  { %s1485_s10 = scalar_lea.hbm %s1819_s0, 2048 }
  0x27   :  { %p1486_p2 = scmp.ne.s32.totalorder %s1819_s0, %s1485_s10  ;;  %p1489_p3 = scmp.lt.u32.totalorder %s1485_s10, %s1819_s0 }
  0x29   :  { %p1491_p4 = pnand %p1489_p3, %p1486_p2 }
  0x2b   :  { %1494 = shalt.err (!%p1491_p4)
}
  0x2c   :  { %s1495_s3 = scalar_lea.vmem %s22_s28, 2048  ;;  %p1500_p6 = scmp.lt.s32.totalorder %s22_s28, %s22_s28 }
  0x2d   :  { %p1496_p5 = scmp.ne.s32.totalorder %s22_s28, %s1495_s3  ;;  %p1501_p7 = scmp.lt.s32.totalorder %s1495_s3, %s1495_s3 }
  0x2f   :  { %p1502_p8 = por %p1501_p7, %p1500_p6 }
  0x31   :  { %p1503_p9 = pnand %p1502_p8, %p1496_p5 }
  0x33   :  { %1506 = shalt.err (!%p1503_p9)
}
  0x34   :  { %27 = dma.hbm_to_vmem [thread:$0]  %s1819_s0, 2048, %s22_s28, [#allocation3], %s1583_s13, %s1583_s13, %s1584_s14  }
  0x35   :  { %s1507_s20 = scalar_lea.hbm %s1821_s2, 128 }
  0x36   :  { %p1508_p10 = scmp.ne.s32.totalorder %s1821_s2, %s1507_s20  ;;  %p1511_p11 = scmp.lt.u32.totalorder %s1507_s20, %s1821_s2 }
  0x38   :  { %p1513_p12 = pnand %p1511_p11, %p1508_p10 }
  0x3a   :  { %1516 = shalt.err (!%p1513_p12)
}
  0x3b   :  { %s1517_s1 = scalar_lea.vmem %s47_s30, 128  ;;  %p1522_p0 = scmp.lt.s32.totalorder %s47_s30, %s47_s30 }
  0x3c   :  { %p1518_p13 = scmp.ne.s32.totalorder %s47_s30, %s1517_s1  ;;  %p1523_p1 = scmp.lt.s32.totalorder %s1517_s1, %s1517_s1 }
  0x3e   :  { %p1524_p2 = por %p1523_p1, %p1522_p0 }
  0x40   :  { %p1525_p3 = pnand %p1524_p2, %p1518_p13 }
  0x42   :  { %1528 = shalt.err (!%p1525_p3)
}
  0x43   :  { %49 = dma.hbm_to_vmem [thread:$0]  %s1821_s2, 128, %s47_s30, [#allocation6]  }
  0x44   :  { %s1587_s26 = smov [#allocation10]   ;;  %s1529_s9 = scalar_lea.hbm %s1824_s5, 2048 }
  0x45   :  { %s69_s28 = sshll.u32 %s1587_s26, 4  ;;  %p1530_p4 = scmp.ne.s32.totalorder %s1824_s5, %s1529_s9  ;;  %s70_s28 = int_to_ptr.vmem [resolvable:$true] %s69_s28 }
  0x46   :  { %p1533_p5 = scmp.lt.u32.totalorder %s1529_s9, %s1824_s5 }
  0x48   :  { %p1535_p6 = pnand %p1533_p5, %p1530_p4 }
  0x4a   :  { %1538 = shalt.err (!%p1535_p6)
}
  0x4b   :  { %s1539_s16 = scalar_lea.vmem %s70_s28, 2048  ;;  %p1544_p8 = scmp.lt.s32.totalorder %s70_s28, %s70_s28 }
  0x4c   :  { %p1540_p7 = scmp.ne.s32.totalorder %s70_s28, %s1539_s16  ;;  %p1545_p9 = scmp.lt.s32.totalorder %s1539_s16, %s1539_s16 }
  0x4e   :  { %p1546_p10 = por %p1545_p9, %p1544_p8 }
  0x50   :  { %p1547_p11 = pnand %p1546_p10, %p1540_p7 }
  0x52   :  { %1550 = shalt.err (!%p1547_p11)
}
  0x53   :  { %75 = dma.hbm_to_vmem [thread:$0]  %s1824_s5, 2048, %s70_s28, [#allocation9], %s1583_s13, %s1583_s13, %s1584_s14  }
  0x54   :  { %1573 = dma.done.wait [#allocation3], 2048  }
  0x55   :  { %1574 = vsyncadd [#allocation3], 4294965248 }
  0x56   :  { %1575 = dma.done.wait [#allocation6], 2176  }
  0x57   :  { %1576 = vsyncadd [#allocation6], 4294965120 }
  0x58   :  { %1577 = dma.done.wait [#allocation9], 4096  }
  0x59   :  { %1578 = vsyncadd [#allocation9], 4294963200  ;;  %v125_v0 = vld [vmem:[#allocation8] sm:$0xff]  ;;  %v126_v1 = vld [vmem:[#allocation8 + $0x8] sm:$0xff]  ;;  %vm1589_vm0 = vmmov 0  }
  0x5a   :  { %v127_v2 = vld [vmem:[#allocation8 + $0x10] sm:$0xff]  ;;  %v1278_v3 = vpack.c.bf16 %v126_v1, %v125_v0  ;;  %v128_v4 = vld [vmem:[#allocation8 + $0x18] sm:$0xff]  ;;  %v129_v6 = vld [vmem:[#allocation8 + $0x20] sm:$0xff] }
  0x5b   :  { %v1282_v5 = vpack.c.bf16 %v128_v4, %v127_v2  ;;  %v130_v7 = vld [vmem:[#allocation8 + $0x28] sm:$0xff]  ;;  %v109_v9 = vld [vmem:[#allocation5] sm:$0xff]  ;;  %v131_v10 = vld [vmem:[#allocation8 + $0x30] sm:$0xff] }
  0x5c   :  { %1279 = vmatprep.subr.bf16.mxu0 %v1278_v3  ;;  %v1286_v8 = vpack.c.bf16 %v130_v7, %v129_v6  ;;  %v132_v11 = vld [vmem:[#allocation8 + $0x38] sm:$0xff]  ;;  %1051 = vmatprep.mubr.f32.mxu0 %v109_v9  ;;  %v133_v13 = vld [vmem:[#allocation8 + $0x40] sm:$0xff]  ;;  %v134_v14 = vld [vmem:[#allocation8 + $0x48] sm:$0xff] }
  0x5d   :  { %1281 = vmatpush3.bf16.msra.mxu0 %v1278_v3  ;;  %v1290_v12 = vpack.c.bf16 %v132_v11, %v131_v10  ;;  %v1294_v15 = vpack.c.bf16 %v134_v14, %v133_v13  ;;  %v135_v16 = vld [vmem:[#allocation8 + $0x50] sm:$0xff]  ;;  %v136_v17 = vld [vmem:[#allocation8 + $0x58] sm:$0xff]  ;;  %v137_v19 = vld [vmem:[#allocation8 + $0x60] sm:$0xff] }
  0x5e   :  { %1283 = vmatprep.subr.bf16.mxu0 %v1282_v5  ;;  %v1298_v18 = vpack.c.bf16 %v136_v17, %v135_v16  ;;  %v138_v20 = vld [vmem:[#allocation8 + $0x68] sm:$0xff]  ;;  %v139_v22 = vld [vmem:[#allocation8 + $0x70] sm:$0xff]  ;;  %v140_v23 = vld [vmem:[#allocation8 + $0x78] sm:$0xff] }
  0x5f   :  { %v1302_v21 = vpack.c.bf16 %v138_v20, %v137_v19  ;;  %v1306_v24 = vpack.c.bf16 %v140_v23, %v139_v22  ;;  %v110_v25 = vld [vmem:[#allocation5 + $0x8] sm:$0xff]  ;;  %v111_v26 = vld [vmem:[#allocation5 + $0x10] sm:$0xff]  ;;  %v112_v27 = vld [vmem:[#allocation5 + $0x18] sm:$0xff] }
  0x60   :  { %v113_v28 = vld [vmem:[#allocation5 + $0x20] sm:$0xff]  ;;  %v114_v29 = vld [vmem:[#allocation5 + $0x28] sm:$0xff]  ;;  %v115_v30 = vld [vmem:[#allocation5 + $0x30] sm:$0xff] }
  0x61   :  { %1285 = vmatpush3.bf16.msra.mxu0 %v1282_v5  ;;  %v116_v31 = vld [vmem:[#allocation5 + $0x38] sm:$0xff]  ;;  %v117_v32 = vld [vmem:[#allocation5 + $0x40] sm:$0xff]  ;;  %v118_v33 = vld [vmem:[#allocation5 + $0x48] sm:$0xff] }
  0x62   :  { %1287 = vmatprep.subr.bf16.mxu0 %v1286_v8  ;;  %v119_v34 = vld [vmem:[#allocation5 + $0x50] sm:$0xff]  ;;  %v120_v35 = vld [vmem:[#allocation5 + $0x58] sm:$0xff]  ;;  %v121_v36 = vld [vmem:[#allocation5 + $0x60] sm:$0xff] }
  0x63   :  { %v122_v37 = vld [vmem:[#allocation5 + $0x68] sm:$0xff]  ;;  %v123_v38 = vld [vmem:[#allocation5 + $0x70] sm:$0xff]  ;;  %v124_v39 = vld [vmem:[#allocation5 + $0x78] sm:$0xff] }
  0x64   :  { %v1711_v40 = vld [vmem:[#allocation2] sm:$0xff]  ;;  %v454_v41 = vld [vmem:[#allocation10] sm:$0xff]  ;;  %v455_v42 = vld [vmem:[#allocation10 + $0x8] sm:$0xff] }
  0x65   :  { %1289 = vmatpush3.bf16.msra.mxu0 %v1286_v8  ;;  %1107 = vmatprep.mubr.f32.mxu1 %v1711_v40  ;;  %v456_v43 = vld [vmem:[#allocation10 + $0x10] sm:$0xff]  ;;  %v1342_v44 = vpack.c.bf16 %v455_v42, %v454_v41  ;;  %v457_v45 = vld [vmem:[#allocation10 + $0x18] sm:$0xff]  ;;  %v458_v47 = vld [vmem:[#allocation10 + $0x20] sm:$0xff] }
  0x66   :  { %1291 = vmatprep.subr.bf16.mxu0 %v1290_v12  ;;  %v1346_v46 = vpack.c.bf16 %v457_v45, %v456_v43  ;;  %v459_v48 = vld [vmem:[#allocation10 + $0x28] sm:$0xff]  ;;  %v460_v50 = vld [vmem:[#allocation10 + $0x30] sm:$0xff]  ;;  %v461_v51 = vld [vmem:[#allocation10 + $0x38] sm:$0xff] }
  0x67   :  { %v1350_v49 = vpack.c.bf16 %v459_v48, %v458_v47  ;;  %v1354_v52 = vpack.c.bf16 %v461_v51, %v460_v50  ;;  %v462_v53 = vld [vmem:[#allocation10 + $0x40] sm:$0xff]  ;;  %v463_v54 = vld [vmem:[#allocation10 + $0x48] sm:$0xff]  ;;  %v464_v56 = vld [vmem:[#allocation10 + $0x50] sm:$0xff] }
  0x68   :  { %v1358_v55 = vpack.c.bf16 %v463_v54, %v462_v53  ;;  %v465_v57 = vld [vmem:[#allocation10 + $0x58] sm:$0xff]  ;;  %v466_v59 = vld [vmem:[#allocation10 + $0x60] sm:$0xff]  ;;  %v467_v60 = vld [vmem:[#allocation10 + $0x68] sm:$0xff] }
  0x69   :  { %1293 = vmatpush3.bf16.msra.mxu0 %v1290_v12  ;;  %v1362_v58 = vpack.c.bf16 %v465_v57, %v464_v56  ;;  %v1366_v61 = vpack.c.bf16 %v467_v60, %v466_v59  ;;  %v1714_v22 = vld [vmem:[#allocation2 + $0x8] sm:$0xff]  ;;  %v1716_v23 = vld [vmem:[#allocation2 + $0x10] sm:$0xff]  ;;  %v872_v41 = vld [vmem:[%s1823_s4] ss:$0 sm:$0xff] }
  0x6a   :  { %1295 = vmatprep.subr.bf16.mxu0 %v1294_v15 }
  0x6d   :  { %1297 = vmatpush3.bf16.msra.mxu0 %v1294_v15 }
  0x6e   :  { %1299 = vmatprep.subr.bf16.mxu0 %v1298_v18 }
  0x71   :  { %1301 = vmatpush3.bf16.msra.mxu0 %v1298_v18 }
  0x72   :  { %1303 = vmatprep.subr.bf16.mxu0 %v1302_v21 }
  0x75   :  { %1305 = vmatpush3.bf16.msra.mxu0 %v1302_v21 }
  0x76   :  { %1307 = vmatprep.subr.bf16.mxu0 %v1306_v24 }
  0x79   :  { %1309 = vmatpush3.bf16.msra.mxu0 %v1306_v24  ;;  %v1720_v24 = vld [vmem:[#allocation2 + $0x18] sm:$0xff] }
  0x7a   :  { %1343 = vmatprep.subr.bf16.mxu0 %v1342_v44 }
  0x7c   :  { %1052 = vmatmul.mubr.f32.vlgmr.msra.gmra.mrb[0].mxu0 %v110_v25  ;;  %v1722_v25 = vld [vmem:[#allocation2 + $0x20] sm:$0xff] }
  0x7d   :  { %1054 = vmatprep.mubr.f32.mxu0 %v111_v26  ;;  %1345 = vmatpush3.bf16.msra.mxu0 %v1342_v44  ;;  %v1726_v26 = vld [vmem:[#allocation2 + $0x28] sm:$0xff] }
  0x7e   :  { %1347 = vmatprep.subr.bf16.mxu0 %v1346_v46 }
  0x80   :  { %1055 = vmatmul.mubr.f32.gmra.mrb[2].mxu0 %v112_v27  ;;  %v1728_v27 = vld [vmem:[#allocation2 + $0x30] sm:$0xff] }
  0x81   :  { %1057 = vmatprep.mubr.f32.mxu0 %v113_v28  ;;  %1349 = vmatpush3.bf16.msra.mxu0 %v1346_v46  ;;  %v1732_v28 = vld [vmem:[#allocation2 + $0x38] sm:$0xff] }
  0x82   :  { %1351 = vmatprep.subr.bf16.mxu0 %v1350_v49 }
  0x84   :  { %1058 = vmatmul.mubr.f32.gmra.mrb[4].mxu0 %v114_v29  ;;  %v1734_v29 = vld [vmem:[#allocation2 + $0x40] sm:$0xff] }
  0x85   :  { %1060 = vmatprep.mubr.f32.mxu0 %v115_v30  ;;  %1353 = vmatpush3.bf16.msra.mxu0 %v1350_v49  ;;  %v1738_v30 = vld [vmem:[#allocation2 + $0x48] sm:$0xff] }
  0x86   :  { %1355 = vmatprep.subr.bf16.mxu0 %v1354_v52 }
  0x88   :  { %1061 = vmatmul.mubr.f32.gmra.mrb[6].mxu0 %v116_v31  ;;  %v1740_v31 = vld [vmem:[#allocation2 + $0x50] sm:$0xff] }
  0x89   :  { %1063 = vmatprep.mubr.f32.mxu0 %v117_v32  ;;  %1357 = vmatpush3.bf16.msra.mxu0 %v1354_v52  ;;  %v1744_v32 = vld [vmem:[#allocation2 + $0x58] sm:$0xff] }
  0x8a   :  { %1359 = vmatprep.subr.bf16.mxu0 %v1358_v55 }
  0x8c   :  { %1064 = vmatmul.mubr.f32.gmra.mrb[8].mxu0 %v118_v33  ;;  %v1746_v33 = vld [vmem:[#allocation2 + $0x60] sm:$0xff] }
  0x8d   :  { %1066 = vmatprep.mubr.f32.mxu0 %v119_v34  ;;  %1361 = vmatpush3.bf16.msra.mxu0 %v1358_v55  ;;  %v1750_v34 = vld [vmem:[#allocation2 + $0x68] sm:$0xff] }
  0x8e   :  { %1363 = vmatprep.subr.bf16.mxu0 %v1362_v58 }
  0x90   :  { %1067 = vmatmul.mubr.f32.gmra.mrb[10].mxu0 %v120_v35  ;;  %v1752_v35 = vld [vmem:[#allocation2 + $0x70] sm:$0xff] }
  0x91   :  { %1069 = vmatprep.mubr.f32.mxu0 %v121_v36  ;;  %1365 = vmatpush3.bf16.msra.mxu0 %v1362_v58  ;;  %v1756_v36 = vld [vmem:[#allocation2 + $0x78] sm:$0xff] }
  0x92   :  { %1367 = vmatprep.subr.bf16.mxu0 %v1366_v61 }
  0x94   :  { %1070 = vmatmul.mubr.f32.gmra.mrb[12].mxu0 %v122_v37  ;;  %v468_v37 = vld [vmem:[#allocation10 + $0x70] sm:$0xff] }
  0x95   :  { %1072 = vmatprep.mubr.f32.mxu0 %v123_v38  ;;  %1369 = vmatpush3.bf16.msra.mxu0 %v1366_v61  ;;  %v469_v38 = vld [vmem:[#allocation10 + $0x78] sm:$0xff] }
  0x98   :  { %1073 = vmatmul.mubr.f32.gmra.mrb[14].mxu0 %v124_v39  ;;  %v1370_v39 = vpack.c.bf16 %v469_v38, %v468_v37 }
  0x9a   :  { %1371 = vmatprep.subr.bf16.mxu0 %v1370_v39 }
  0x9b   :  { %1373 = vmatpush3.bf16.msra.mxu0 %v1370_v39 }
 0x14f   :  { %v1053_v62 = vpop.f32.mrb[0].mxu0 }
 0x150   :  { %v208_v63 = vpop.f32.mrb[1].mxu0 }
 0x151   :  { %v1310_v0 = vpack.c.bf16 %v1053_v62, %v208_v63 }
 0x153   :  { %v1056_v1 = vpop.f32.mrb[2].mxu0  ;;  %1311 = vmatprep.subr.bf16.mxu1 %v1310_v0 }
 0x154   :  { %v218_v2 = vpop.f32.mrb[3].mxu0  ;;  %1313 = vmatpush3.bf16.msra.mxu1 %v1310_v0 }
 0x155   :  { %v1314_v3 = vpack.c.bf16 %v1056_v1, %v218_v2 }
 0x157   :  { %v1059_v4 = vpop.f32.mrb[4].mxu0  ;;  %1315 = vmatprep.subr.bf16.mxu1 %v1314_v3 }
 0x158   :  { %v228_v5 = vpop.f32.mrb[5].mxu0  ;;  %1317 = vmatpush3.bf16.msra.mxu1 %v1314_v3 }
 0x159   :  { %v1318_v6 = vpack.c.bf16 %v1059_v4, %v228_v5 }
 0x15b   :  { %v1062_v7 = vpop.f32.mrb[6].mxu0  ;;  %1319 = vmatprep.subr.bf16.mxu1 %v1318_v6 }
 0x15c   :  { %v238_v8 = vpop.f32.mrb[7].mxu0  ;;  %1321 = vmatpush3.bf16.msra.mxu1 %v1318_v6 }
 0x15d   :  { %v1322_v9 = vpack.c.bf16 %v1062_v7, %v238_v8 }
 0x15f   :  { %v1065_v10 = vpop.f32.mrb[8].mxu0  ;;  %1323 = vmatprep.subr.bf16.mxu1 %v1322_v9 }
 0x160   :  { %v248_v11 = vpop.f32.mrb[9].mxu0  ;;  %1325 = vmatpush3.bf16.msra.mxu1 %v1322_v9 }
 0x161   :  { %v1326_v12 = vpack.c.bf16 %v1065_v10, %v248_v11 }
 0x163   :  { %v1068_v13 = vpop.f32.mrb[10].mxu0  ;;  %1327 = vmatprep.subr.bf16.mxu1 %v1326_v12 }
 0x164   :  { %v258_v14 = vpop.f32.mrb[11].mxu0  ;;  %1329 = vmatpush3.bf16.msra.mxu1 %v1326_v12 }
 0x165   :  { %v1330_v15 = vpack.c.bf16 %v1068_v13, %v258_v14 }
 0x167   :  { %v1071_v16 = vpop.f32.mrb[12].mxu0  ;;  %1331 = vmatprep.subr.bf16.mxu1 %v1330_v15 }
 0x168   :  { %v268_v17 = vpop.f32.mrb[13].mxu0  ;;  %1333 = vmatpush3.bf16.msra.mxu1 %v1330_v15 }
 0x169   :  { %v1334_v18 = vpack.c.bf16 %v1071_v16, %v268_v17 }
 0x16b   :  { %v1074_v19 = vpop.f32.mrb[14].mxu0  ;;  %1335 = vmatprep.subr.bf16.mxu1 %v1334_v18 }
 0x16c   :  { %v278_v20 = vpop.f32.mrb[15].mxu0  ;;  %1337 = vmatpush3.bf16.msra.mxu1 %v1334_v18 }
 0x16d   :  { %v1338_v21 = vpack.c.bf16 %v1074_v19, %v278_v20 }
 0x16f   :  { %1339 = vmatprep.subr.bf16.mxu1 %v1338_v21 }
 0x170   :  { %1341 = vmatpush3.bf16.msra.mxu1 %v1338_v21 }
 0x173   :  { %1108 = vmatmul.mubr.f32.vlgmr.msra.gmra.mrb[0].mxu1 %v1714_v22 }
 0x174   :  { %1110 = vmatprep.mubr.f32.mxu1 %v1716_v23 }
 0x177   :  { %1111 = vmatmul.mubr.f32.gmra.mrb[2].mxu1 %v1720_v24 }
 0x178   :  { %1113 = vmatprep.mubr.f32.mxu1 %v1722_v25 }
 0x17b   :  { %1114 = vmatmul.mubr.f32.gmra.mrb[4].mxu1 %v1726_v26 }
 0x17c   :  { %1116 = vmatprep.mubr.f32.mxu1 %v1728_v27 }
 0x17f   :  { %1117 = vmatmul.mubr.f32.gmra.mrb[6].mxu1 %v1732_v28 }
 0x180   :  { %1119 = vmatprep.mubr.f32.mxu1 %v1734_v29 }
 0x183   :  { %1120 = vmatmul.mubr.f32.gmra.mrb[8].mxu1 %v1738_v30 }
 0x184   :  { %1122 = vmatprep.mubr.f32.mxu1 %v1740_v31 }
 0x187   :  { %1123 = vmatmul.mubr.f32.gmra.mrb[10].mxu1 %v1744_v32 }
 0x188   :  { %1125 = vmatprep.mubr.f32.mxu1 %v1746_v33 }
 0x18b   :  { %1126 = vmatmul.mubr.f32.gmra.mrb[12].mxu1 %v1750_v34 }
 0x18c   :  { %1128 = vmatprep.mubr.f32.mxu1 %v1752_v35 }
 0x18f   :  { %1129 = vmatmul.mubr.f32.gmra.mrb[14].mxu1 %v1756_v36 }
 0x190   :  { %1219 = vmatprep.mubr.f32.mxu1 %v1711_v40 }
 0x246   :  { %v1109_v42 = vpop.f32.mrb[0].mxu1 }
 0x247   :  { %v365_v43 = vadd.f32 %v1109_v42, %v872_v41  ;;  %v359_v44 = vpop.f32.mrb[1].mxu1 }
 0x248   :  { %v360_v45 = vadd.f32 %v872_v41, %v359_v44 }
 0x249   :  { %v439_v48 = vmax.f32 %v365_v43, 0.0 }
 0x24a   :  { %v438_v46 = vmax.f32 %v360_v45, 0.0  ;;  %v1112_v47 = vpop.f32.mrb[2].mxu1 }
 0x24b   :  { %v375_v49 = vadd.f32 %v1112_v47, %v872_v41  ;;  %v369_v50 = vpop.f32.mrb[3].mxu1 }
 0x24c   :  { %v370_v51 = vadd.f32 %v872_v41, %v369_v50  ;;  %1163 = vmatprep.mubr.f32.mxu0 %v438_v46 }
 0x24d   :  { %1164 = vmatmul.mubr.f32.vlgmr.msra.gmra.mrb[16].mxu0 %v439_v48  ;;  %v441_v53 = vmax.f32 %v375_v49, 0.0 }
 0x24e   :  { %v440_v40 = vmax.f32 %v370_v51, 0.0  ;;  %v1115_v52 = vpop.f32.mrb[4].mxu1 }
 0x24f   :  { %v385_v54 = vadd.f32 %v1115_v52, %v872_v41  ;;  %v379_v55 = vpop.f32.mrb[5].mxu1 }
 0x250   :  { %v380_v56 = vadd.f32 %v872_v41, %v379_v55  ;;  %1166 = vmatprep.mubr.f32.mxu0 %v440_v40 }
 0x251   :  { %1167 = vmatmul.mubr.f32.gmra.mrb[18].mxu0 %v441_v53  ;;  %v443_v59 = vmax.f32 %v385_v54, 0.0 }
 0x252   :  { %v442_v57 = vmax.f32 %v380_v56, 0.0  ;;  %v1118_v58 = vpop.f32.mrb[6].mxu1 }
 0x253   :  { %v395_v60 = vadd.f32 %v1118_v58, %v872_v41  ;;  %v389_v61 = vpop.f32.mrb[7].mxu1 }
 0x254   :  { %v390_v62 = vadd.f32 %v872_v41, %v389_v61  ;;  %1169 = vmatprep.mubr.f32.mxu0 %v442_v57 }
 0x255   :  { %1170 = vmatmul.mubr.f32.gmra.mrb[20].mxu0 %v443_v59  ;;  %v445_v1 = vmax.f32 %v395_v60, 0.0 }
 0x256   :  { %v444_v63 = vmax.f32 %v390_v62, 0.0  ;;  %v1121_v0 = vpop.f32.mrb[8].mxu1 }
 0x257   :  { %v405_v2 = vadd.f32 %v1121_v0, %v872_v41  ;;  %v399_v3 = vpop.f32.mrb[9].mxu1 }
 0x258   :  { %v400_v4 = vadd.f32 %v872_v41, %v399_v3  ;;  %1172 = vmatprep.mubr.f32.mxu0 %v444_v63 }
 0x259   :  { %1173 = vmatmul.mubr.f32.gmra.mrb[22].mxu0 %v445_v1  ;;  %v447_v7 = vmax.f32 %v405_v2, 0.0 }
 0x25a   :  { %v446_v5 = vmax.f32 %v400_v4, 0.0  ;;  %v1124_v6 = vpop.f32.mrb[10].mxu1 }
 0x25b   :  { %v415_v8 = vadd.f32 %v1124_v6, %v872_v41  ;;  %v409_v9 = vpop.f32.mrb[11].mxu1 }
 0x25c   :  { %v410_v10 = vadd.f32 %v872_v41, %v409_v9  ;;  %1175 = vmatprep.mubr.f32.mxu0 %v446_v5 }
 0x25d   :  { %1176 = vmatmul.mubr.f32.gmra.mrb[24].mxu0 %v447_v7  ;;  %v449_v13 = vmax.f32 %v415_v8, 0.0 }
 0x25e   :  { %v448_v11 = vmax.f32 %v410_v10, 0.0  ;;  %v1127_v12 = vpop.f32.mrb[12].mxu1 }
 0x25f   :  { %v425_v14 = vadd.f32 %v1127_v12, %v872_v41  ;;  %v419_v15 = vpop.f32.mrb[13].mxu1 }
 0x260   :  { %v420_v16 = vadd.f32 %v872_v41, %v419_v15  ;;  %1178 = vmatprep.mubr.f32.mxu0 %v448_v11 }
 0x261   :  { %1179 = vmatmul.mubr.f32.gmra.mrb[26].mxu0 %v449_v13  ;;  %v451_v19 = vmax.f32 %v425_v14, 0.0 }
 0x262   :  { %v450_v17 = vmax.f32 %v420_v16, 0.0  ;;  %v1130_v18 = vpop.f32.mrb[14].mxu1 }
 0x263   :  { %v435_v20 = vadd.f32 %v1130_v18, %v872_v41  ;;  %v429_v21 = vpop.f32.mrb[15].mxu1 }
 0x264   :  { %v430_v37 = vadd.f32 %v872_v41, %v429_v21  ;;  %1181 = vmatprep.mubr.f32.mxu0 %v450_v17 }
 0x265   :  { %1182 = vmatmul.mubr.f32.gmra.mrb[28].mxu0 %v451_v19  ;;  %v453_v39 = vmax.f32 %v435_v20, 0.0 }
 0x266   :  { %v452_v38 = vmax.f32 %v430_v37, 0.0 }
 0x268   :  { %1184 = vmatprep.mubr.f32.mxu0 %v452_v38 }
 0x269   :  { %1185 = vmatmul.mubr.f32.gmra.mrb[30].mxu0 %v453_v39 }
 0x320   :  { %v1165_v42 = vpop.f32.mrb[16].mxu0 }
 0x321   :  { %v537_v43 = vpop.f32.mrb[17].mxu0 }
 0x322   :  { %v1374_v44 = vpack.c.bf16 %v1165_v42, %v537_v43 }
 0x324   :  { %v1168_v45 = vpop.f32.mrb[18].mxu0  ;;  %1375 = vmatprep.subr.bf16.mxu1 %v1374_v44 }
 0x325   :  { %v547_v46 = vpop.f32.mrb[19].mxu0  ;;  %1377 = vmatpush3.bf16.msra.mxu1 %v1374_v44 }
 0x326   :  { %v1378_v47 = vpack.c.bf16 %v1168_v45, %v547_v46 }
 0x328   :  { %v1171_v48 = vpop.f32.mrb[20].mxu0  ;;  %1379 = vmatprep.subr.bf16.mxu1 %v1378_v47 }
 0x329   :  { %v557_v49 = vpop.f32.mrb[21].mxu0  ;;  %1381 = vmatpush3.bf16.msra.mxu1 %v1378_v47 }
 0x32a   :  { %v1382_v50 = vpack.c.bf16 %v1171_v48, %v557_v49 }
 0x32c   :  { %v1174_v41 = vpop.f32.mrb[22].mxu0  ;;  %1383 = vmatprep.subr.bf16.mxu1 %v1382_v50 }
 0x32d   :  { %v567_v51 = vpop.f32.mrb[23].mxu0  ;;  %1385 = vmatpush3.bf16.msra.mxu1 %v1382_v50 }
 0x32e   :  { %v1386_v40 = vpack.c.bf16 %v1174_v41, %v567_v51 }
 0x330   :  { %v1177_v52 = vpop.f32.mrb[24].mxu0  ;;  %1387 = vmatprep.subr.bf16.mxu1 %v1386_v40 }
 0x331   :  { %v577_v53 = vpop.f32.mrb[25].mxu0  ;;  %1389 = vmatpush3.bf16.msra.mxu1 %v1386_v40 }
 0x332   :  { %v1390_v54 = vpack.c.bf16 %v1177_v52, %v577_v53 }
 0x334   :  { %v1180_v55 = vpop.f32.mrb[26].mxu0  ;;  %1391 = vmatprep.subr.bf16.mxu1 %v1390_v54 }
 0x335   :  { %v587_v56 = vpop.f32.mrb[27].mxu0  ;;  %1393 = vmatpush3.bf16.msra.mxu1 %v1390_v54 }
 0x336   :  { %v1394_v57 = vpack.c.bf16 %v1180_v55, %v587_v56 }
 0x338   :  { %v1183_v58 = vpop.f32.mrb[28].mxu0  ;;  %1395 = vmatprep.subr.bf16.mxu1 %v1394_v57 }
 0x339   :  { %v597_v59 = vpop.f32.mrb[29].mxu0  ;;  %1397 = vmatpush3.bf16.msra.mxu1 %v1394_v57 }
 0x33a   :  { %v1398_v60 = vpack.c.bf16 %v1183_v58, %v597_v59  ;;  %v783_v59 = vld [vmem:[#allocation7] sm:$0xff] }
 0x33c   :  { %v1186_v61 = vpop.f32.mrb[30].mxu0  ;;  %1399 = vmatprep.subr.bf16.mxu1 %v1398_v60 }
 0x33d   :  { %v607_v62 = vpop.f32.mrb[31].mxu0  ;;  %1401 = vmatpush3.bf16.msra.mxu1 %v1398_v60 }
 0x33e   :  { %v1402_v63 = vpack.c.bf16 %v1186_v61, %v607_v62 }
 0x340   :  { %1403 = vmatprep.subr.bf16.mxu1 %v1402_v63 }
 0x341   :  { %1405 = vmatpush3.bf16.msra.mxu1 %v1402_v63 }
 0x344   :  { %1220 = vmatmul.mubr.f32.vlgmr.msra.gmra.mrb[16].mxu1 %v1714_v22  ;;  %v1588_v22 = vmov 0.0|0.0  }
 0x345   :  { %1222 = vmatprep.mubr.f32.mxu1 %v1716_v23  ;;  %1406 = vmatprep.subr.bf16.mxu0 %v1588_v22  ;;  %v1590_v23 = vmov 0.0  }
 0x346   :  { %1275 = vmatprep.mubr.msk.f32.mxu0 %vm1589_vm0, %v1590_v23 }
 0x348   :  { %1223 = vmatmul.mubr.f32.gmra.mrb[18].mxu1 %v1720_v24  ;;  %v1782_v24 = vld [vmem:[%s1825_s6] ss:$0 sm:$0xff]  ;;  %s1591_s6 = smov [#allocation11]  }
 0x349   :  { %1225 = vmatprep.mubr.f32.mxu1 %v1722_v25  ;;  %s861_s3 = sshll.u32 %s1591_s6, 4  ;;  %s862_s3 = int_to_ptr.vmem [resolvable:$true] %s861_s3 }
 0x34a   :  { %s1551_s27 = scalar_lea.vmem %s862_s3, 128  ;;  %p1556_p13 = scmp.lt.s32.totalorder %s862_s3, %s862_s3 }
 0x34b   :  { %p1552_p12 = scmp.ne.s32.totalorder %s862_s3, %s1551_s27  ;;  %p1557_p0 = scmp.lt.s32.totalorder %s1551_s27, %s1551_s27 }
 0x34c   :  { %1226 = vmatmul.mubr.f32.gmra.mrb[20].mxu1 %v1726_v26 }
 0x34d   :  { %1228 = vmatprep.mubr.f32.mxu1 %v1728_v27  ;;  %p1558_p1 = por %p1557_p0, %p1556_p13 }
 0x34f   :  { %p1559_p2 = pnand %p1558_p1, %p1552_p12 }
 0x350   :  { %1229 = vmatmul.mubr.f32.gmra.mrb[22].mxu1 %v1732_v28 }
 0x351   :  { %1231 = vmatprep.mubr.f32.mxu1 %v1734_v29 }
 0x354   :  { %1232 = vmatmul.mubr.f32.gmra.mrb[24].mxu1 %v1738_v30 }
 0x355   :  { %1234 = vmatprep.mubr.f32.mxu1 %v1740_v31 }
 0x358   :  { %1235 = vmatmul.mubr.f32.gmra.mrb[26].mxu1 %v1744_v32 }
 0x359   :  { %1237 = vmatprep.mubr.f32.mxu1 %v1746_v33 }
 0x35c   :  { %1238 = vmatmul.mubr.f32.gmra.mrb[28].mxu1 %v1750_v34 }
 0x35d   :  { %1240 = vmatprep.mubr.f32.mxu1 %v1752_v35 }
 0x360   :  { %1241 = vmatmul.mubr.f32.gmra.mrb[30].mxu1 %v1756_v36 }
 0x417   :  { %v1221_v25 = vpop.f32.mrb[16].mxu1 }
 0x418   :  { %v694_v26 = vadd.f32 %v1221_v25, %v1782_v24  ;;  %v688_v27 = vpop.f32.mrb[17].mxu1 }
 0x419   :  { %v689_v28 = vadd.f32 %v1782_v24, %v688_v27 }
 0x41a   :  { %v768_v29 = vmax.f32 %v694_v26, 0.0 }
 0x41b   :  { %v767_v30 = vmax.f32 %v689_v28, 0.0  ;;  %v1224_v31 = vpop.f32.mrb[18].mxu1 }
 0x41c   :  { %v704_v32 = vadd.f32 %v1224_v31, %v1782_v24  ;;  %v698_v33 = vpop.f32.mrb[19].mxu1 }
 0x41d   :  { %v1407_v34 = vpack.c.bf16 %v768_v29, %v767_v30  ;;  %v699_v35 = vadd.f32 %v1782_v24, %v698_v33 }
 0x41e   :  { %v770_v36 = vmax.f32 %v704_v32, 0.0 }
 0x41f   :  { %v769_v0 = vmax.f32 %v699_v35, 0.0  ;;  %v1227_v1 = vpop.f32.mrb[20].mxu1  ;;  %1408 = vmatpush3.bf16.msra.mxu0 %v1407_v34 }
 0x420   :  { %v714_v2 = vadd.f32 %v1227_v1, %v1782_v24  ;;  %v708_v3 = vpop.f32.mrb[21].mxu1  ;;  %1409 = vmatprep.subr.bf16.mxu0 %v1588_v22 }
 0x421   :  { %v1410_v4 = vpack.c.bf16 %v770_v36, %v769_v0  ;;  %v709_v5 = vadd.f32 %v1782_v24, %v708_v3 }
 0x422   :  { %v772_v6 = vmax.f32 %v714_v2, 0.0 }
 0x423   :  { %v771_v7 = vmax.f32 %v709_v5, 0.0  ;;  %v1230_v8 = vpop.f32.mrb[22].mxu1  ;;  %1411 = vmatpush3.bf16.msra.mxu0 %v1410_v4 }
 0x424   :  { %v724_v9 = vadd.f32 %v1230_v8, %v1782_v24  ;;  %v718_v10 = vpop.f32.mrb[23].mxu1  ;;  %1412 = vmatprep.subr.bf16.mxu0 %v1588_v22 }
 0x425   :  { %v1413_v11 = vpack.c.bf16 %v772_v6, %v771_v7  ;;  %v719_v12 = vadd.f32 %v1782_v24, %v718_v10 }
 0x426   :  { %v774_v13 = vmax.f32 %v724_v9, 0.0 }
 0x427   :  { %v773_v14 = vmax.f32 %v719_v12, 0.0  ;;  %v1233_v15 = vpop.f32.mrb[24].mxu1  ;;  %1414 = vmatpush3.bf16.msra.mxu0 %v1413_v11 }
 0x428   :  { %v734_v16 = vadd.f32 %v1233_v15, %v1782_v24  ;;  %v728_v17 = vpop.f32.mrb[25].mxu1  ;;  %1415 = vmatprep.subr.bf16.mxu0 %v1588_v22 }
 0x429   :  { %v1416_v18 = vpack.c.bf16 %v774_v13, %v773_v14  ;;  %v729_v19 = vadd.f32 %v1782_v24, %v728_v17 }
 0x42a   :  { %v776_v20 = vmax.f32 %v734_v16, 0.0 }
 0x42b   :  { %v775_v21 = vmax.f32 %v729_v19, 0.0  ;;  %v1236_v37 = vpop.f32.mrb[26].mxu1  ;;  %1417 = vmatpush3.bf16.msra.mxu0 %v1416_v18 }
 0x42c   :  { %v744_v38 = vadd.f32 %v1236_v37, %v1782_v24  ;;  %v738_v39 = vpop.f32.mrb[27].mxu1  ;;  %1418 = vmatprep.subr.bf16.mxu0 %v1588_v22 }
 0x42d   :  { %v1419_v42 = vpack.c.bf16 %v776_v20, %v775_v21  ;;  %v739_v43 = vadd.f32 %v1782_v24, %v738_v39 }
 0x42e   :  { %v778_v44 = vmax.f32 %v744_v38, 0.0 }
 0x42f   :  { %v777_v45 = vmax.f32 %v739_v43, 0.0  ;;  %v1239_v46 = vpop.f32.mrb[28].mxu1  ;;  %1420 = vmatpush3.bf16.msra.mxu0 %v1419_v42 }
 0x430   :  { %v754_v47 = vadd.f32 %v1239_v46, %v1782_v24  ;;  %v748_v48 = vpop.f32.mrb[29].mxu1  ;;  %1421 = vmatprep.subr.bf16.mxu0 %v1588_v22 }
 0x431   :  { %v1422_v49 = vpack.c.bf16 %v778_v44, %v777_v45  ;;  %v749_v50 = vadd.f32 %v1782_v24, %v748_v48 }
 0x432   :  { %v780_v41 = vmax.f32 %v754_v47, 0.0 }
 0x433   :  { %v779_v51 = vmax.f32 %v749_v50, 0.0  ;;  %v1242_v40 = vpop.f32.mrb[30].mxu1  ;;  %1423 = vmatpush3.bf16.msra.mxu0 %v1422_v49 }
 0x434   :  { %v764_v52 = vadd.f32 %v1242_v40, %v1782_v24  ;;  %v758_v53 = vpop.f32.mrb[31].mxu1  ;;  %1424 = vmatprep.subr.bf16.mxu0 %v1588_v22 }
 0x435   :  { %v1425_v54 = vpack.c.bf16 %v780_v41, %v779_v51  ;;  %v759_v55 = vadd.f32 %v1782_v24, %v758_v53 }
 0x436   :  { %v782_v56 = vmax.f32 %v764_v52, 0.0 }
 0x437   :  { %v781_v57 = vmax.f32 %v759_v55, 0.0  ;;  %1426 = vmatpush3.bf16.msra.mxu0 %v1425_v54 }
 0x438   :  { %1427 = vmatprep.subr.bf16.mxu0 %v1588_v22 }
 0x439   :  { %v1428_v58 = vpack.c.bf16 %v782_v56, %v781_v57 }
 0x43b   :  { %1429 = vmatpush3.bf16.msra.mxu0 %v1428_v58 }
 0x43e   :  { %1276 = vmatmul.mubr.f32.vlgmr.msra.gmra.mrb[32].mxu0 %v783_v59 }
 0x511   :  { %v850_v60 = vpop.f32.mrb[32].mxu0 }
 0x512   :  { %854 = vst [vmem:[#allocation11] sm:$0xff] %v850_v60  ;;  %v1277_v61 = vpop.f32.mrb[33].mxu0 }
 0x513   :  { %1562 = shalt.err (!%p1559_p2)
}
 0x514   :  { %s1563_s19 = scalar_lea.hbm %s1826_s7, 128 }
 0x515   :  { %p1564_p3 = scmp.ne.s32.totalorder %s1826_s7, %s1563_s19  ;;  %p1567_p4 = scmp.lt.u32.totalorder %s1563_s19, %s1826_s7 }
 0x517   :  { %p1569_p5 = pnand %p1567_p4, %p1564_p3 }
 0x519   :  { %1572 = shalt.err (!%p1569_p5)
}
 0x51a   :  { %864 = dma.vmem_to_hbm [thread:$0]  %s862_s3, 128, %s1826_s7, [#allocation4]  }
 0x51b   :  { %1579 = dma.done.wait [#allocation4], 128  }
 0x51c   :  { %1580 = vsyncadd [#allocation4], 4294967168 }
 0x51d   :  { %868 = vsyncpa [#allocation3], 1 }
 0x51e   :  { %869 = vsyncpa [#allocation6], 1 }
 0x51f   :  { %870 = vsyncpa [#allocation9], 1 }
 0x520   :  { %871 = vsyncpa [#allocation4], 1 }

</bundles_post_ra>
